<compile_context>
chip_gen: v6e
topology: v6e:2x2x1
jax: 0.10.0
libtpu: 0.0.40
codegen_flags: <defaults>
</compile_context>

<pallas_src>
import functools

import jax
import jax.numpy as jnp
from jax.experimental import pallas as pl
from jax.experimental.pallas import tpu as pltpu

_LANE = 128


def _rms_norm_kernel(x_ref, w_ref, o_ref, *, eps, inv_h):
    # fp32 math per module semantics; single downcast at the end.
    x32 = x_ref[...].astype(jnp.float32)                      # (tile_rows, Hp)
    ss = jnp.sum(x32 * x32, axis=-1, keepdims=True)           # fp32 row sums
    inv = jax.lax.rsqrt(ss * inv_h + eps)                     # per-row, EUP
    # Two per-element muls total: (inv * w) broadcast, then * x32.
    # w_ref is already fp32 (pre-cast in wrapper), shape (1, Hp).
    o_ref[...] = (x32 * (inv * w_ref[...])).astype(o_ref.dtype)


def _vmem_budget_bytes():
    """(live-tile budget, scoped vmem limit) sized from this chip's VMEM."""
    try:
        cap = int(pltpu.get_tpu_info().vmem_capacity_bytes)
    except Exception:  # conservative fallback == v7x per-TC VMEM
        cap = 64 * 1024 * 1024
    budget = cap // 2                                   # 64 MiB v5e/v6e, 32 MiB v7x
    limit = min(3 * cap // 4, cap - 8 * 1024 * 1024)    # 96 MiB v5e/v6e, 48 MiB v7x
    return budget, limit


def _choose_tile_rows(rows, hidden, in_itemsize, out_itemsize, budget):
    """Row tile sized by the VMEM byte budget, aligned to the packed sublane tile."""
    # Packed-row alignment: bf16 packs 2 rows/sublane, int8/fp8 pack 4.
    if in_itemsize == 1:
        align = 32
    elif in_itemsize == 2:
        align = 16
    else:
        align = 8
    # Live bytes per (row, hidden) element: 2x double-buffered input,
    # 2x double-buffered output, ~2 fp32 temporaries inside the body.
    per_elem = 2 * in_itemsize + 2 * out_itemsize + 8
    t = budget // (per_elem * hidden)
    t = max(align, min(int(t), 4096))
    t = (t // align) * align
    if t >= rows:
        # Keep >= ~4 grid steps so DMA/compute overlap and the row axis can
        # shard across both TensorCores on v7x (last block may be partial).
        t = max(align, ((rows // 4) // align) * align)
        if t >= rows:
            t = rows  # tiny input: one full-extent block (always legal)
    return t


def rms_norm_pallas(x, weight, eps=1e-5, *, tile_rows=None):
    """RMSNorm over the last axis. Output dtype == weight.dtype (as in the module)."""
    orig_shape = x.shape
    hidden = orig_shape[-1]
    assert weight.shape == (hidden,)
    out_dtype = weight.dtype

    # Free for contiguous (..., hidden) layouts (no HBM copy).
    x2d = x.reshape(-1, hidden)
    rows = x2d.shape[0]

    # Keep output stores lane-dense: pad the last dim to a multiple of 128 if
    # needed.  Zero columns add 0 to the sum of squares; 1/H uses original H.
    pad = (-hidden) % _LANE
    w32 = weight.astype(jnp.float32)
    if pad:
        x2d = jnp.pad(x2d, ((0, 0), (0, pad)))
        w32 = jnp.pad(w32, (0, pad))
    hidden_p = hidden + pad
    w2d = w32.reshape(1, hidden_p)

    budget, vmem_limit = _vmem_budget_bytes()
    if tile_rows is None:
        tile_rows = _choose_tile_rows(
            rows, hidden_p, x.dtype.itemsize, jnp.dtype(out_dtype).itemsize, budget
        )
    tile_rows = min(tile_rows, rows)

    grid = (pl.cdiv(rows, tile_rows),)

    cost = pl.CostEstimate(
        flops=3 * rows * hidden_p,
        transcendentals=rows,
        bytes_accessed=rows * hidden_p
        * (x.dtype.itemsize + jnp.dtype(out_dtype).itemsize)
        + hidden_p * 4,
    )

    # TODO(synk): if xprof shows exposed DMA on v7x at this tile size, add
    # pipeline_mode=pl.Buffered(3) on the x input spec (re-check VMEM budget).
    out = pl.pallas_call(
        functools.partial(_rms_norm_kernel, eps=float(eps), inv_h=1.0 / float(hidden)),
        out_shape=jax.ShapeDtypeStruct((rows, hidden_p), out_dtype),
        grid_spec=pltpu.PrefetchScalarGridSpec(
            num_scalar_prefetch=0,
            grid=grid,
            in_specs=[
                pl.BlockSpec((tile_rows, hidden_p), lambda i: (i, 0)),
                pl.BlockSpec((1, hidden_p), lambda i: (0, 0)),  # fetched once
            ],
            out_specs=pl.BlockSpec((tile_rows, hidden_p), lambda i: (i, 0)),
        ),
        compiler_params=pltpu.CompilerParams(
            dimension_semantics=("parallel",),  # shards rows across TCs (v7x)
            vmem_limit_bytes=int(vmem_limit),
        ),
        cost_estimate=cost,
    )(x2d, w2d)

    if pad:
        out = out[:, :hidden]
    return out.reshape(orig_shape)


def rms_norm_ref(x, weight, eps=1e-5):
    x32 = x.astype(jnp.float32)
    w32 = weight.astype(jnp.float32)
    ms = jnp.mean(x32 * x32, axis=-1, keepdims=True)
    return (x32 * jax.lax.rsqrt(ms + eps) * w32).astype(weight.dtype)


if __name__ == "__main__":
    key = jax.random.PRNGKey(0)
    batch, seq, hidden = 2, 8, 32

    x = jax.random.normal(key, (batch, seq, hidden), dtype=jnp.bfloat16)
    # Module initializes weight with ones (reset_parameters -> init.ones_).
    weight = jnp.ones((hidden,), dtype=jnp.bfloat16)

    out = rms_norm_pallas(x, weight, eps=1e-5)
    out = jax.block_until_ready(out)

    ref = rms_norm_ref(x, weight, eps=1e-5)
    assert out.shape == x.shape and out.dtype == weight.dtype
    assert jnp.allclose(out.astype(jnp.float32), ref.astype(jnp.float32),
                        atol=1e-2, rtol=1e-2)
    print("KERNEL_OK")
</pallas_src>

<mosaic_0001>
module attributes {stable_mosaic.version = 11 : i64} {
  func.func @_rms_norm_kernel(%arg0: i32, %arg1: memref<16x128xbf16, #tpu.memory_space<vmem>>, %arg2: memref<1x128xf32, #tpu.memory_space<vmem>>, %arg3: memref<16x128xbf16, #tpu.memory_space<vmem>>) attributes {dimension_semantics = [#tpu.dimension_semantics<parallel>], iteration_bounds = array<i64: 1>, scalar_prefetch = 0 : i64, scratch_operands = 0 : i64, tpu.core_type = #tpu.core_type<tc>, window_params = [{transform_indices = @transform_0, window_bounds = array<i64: 16, 128>}, {pipeline_mode = #tpu.pipeline_mode<synchronous>, transform_indices = @transform_1, window_bounds = array<i64: 1, 128>}, {transform_indices = @transform_2, window_bounds = array<i64: 16, 128>}]} {
    %c0 = arith.constant 0 : index
    %c0_0 = arith.constant 0 : index
    %0 = vector.load %arg1[%c0, %c0_0] : memref<16x128xbf16, #tpu.memory_space<vmem>>, vector<16x128xbf16>
    %1 = arith.extf %0 : vector<16x128xbf16> to vector<16x128xf32>
    %2 = arith.mulf %1, %1 : vector<16x128xf32>
    %cst = arith.constant dense<0.000000e+00> : vector<16xf32>
    %3 = vector.multi_reduction <add>, %2, %cst [1] : vector<16x128xf32> to vector<16xf32>
    %4 = vector.shape_cast %3 : vector<16xf32> to vector<16x1xf32>
    %cst_1 = arith.constant 3.125000e-02 : f32
    %5 = vector.broadcast %cst_1 : f32 to vector<16x1xf32>
    %6 = arith.mulf %4, %5 : vector<16x1xf32>
    %cst_2 = arith.constant 9.99999974E-6 : f32
    %7 = vector.broadcast %cst_2 : f32 to vector<16x1xf32>
    %8 = arith.addf %6, %7 : vector<16x1xf32>
    %9 = math.rsqrt %8 : vector<16x1xf32>
    %c0_3 = arith.constant 0 : index
    %c0_4 = arith.constant 0 : index
    %10 = vector.load %arg2[%c0_3, %c0_4] : memref<1x128xf32, #tpu.memory_space<vmem>>, vector<1x128xf32>
    %11 = vector.broadcast %9 : vector<16x1xf32> to vector<16x128xf32>
    %12 = vector.broadcast %10 : vector<1x128xf32> to vector<16x128xf32>
    %13 = arith.mulf %11, %12 : vector<16x128xf32>
    %14 = arith.mulf %1, %13 : vector<16x128xf32>
    %15 = arith.truncf %14 : vector<16x128xf32> to vector<16x128xbf16>
    %c0_5 = arith.constant 0 : index
    %c0_6 = arith.constant 0 : index
    %16 = vector.load %arg3[%c0_5, %c0_6] : memref<16x128xbf16, #tpu.memory_space<vmem>>, vector<16x128xbf16>
    tpu.vector_store %arg3[%c0_5, %c0_6], %15 {strides = array<i32>} : memref<16x128xbf16, #tpu.memory_space<vmem>>, vector<16x128xbf16>,
    return
  }
  func.func @transform_0(%arg0: i32) -> (i32, i32) {
    %c0_i32 = arith.constant 0 : i32
    %c0_i32_0 = arith.constant 0 : i32
    return %arg0, %c0_i32 : i32, i32
  }
  func.func @transform_1(%arg0: i32) -> (i32, i32) {
    %c0_i32 = arith.constant 0 : i32
    %c0_i32_0 = arith.constant 0 : i32
    %c0_i32_1 = arith.constant 0 : i32
    return %c0_i32, %c0_i32_0 : i32, i32
  }
  func.func @transform_2(%arg0: i32) -> (i32, i32) {
    %c0_i32 = arith.constant 0 : i32
    %c0_i32_0 = arith.constant 0 : i32
    return %arg0, %c0_i32 : i32, i32
  }
}

</mosaic_0001>

<bundles_post_ra>
// kernel: tpu_custom_call.1
= control target key start
LH: loop header
LB: loop body
LE: loop exit
PB: predicated region body
PF: predicated region fallthrough
CT: control target
= control target key end

     0   :  { %7 = vsyncpa [#allocation3], 0  ;;  %s180_s0 = inlined_call_operand.hbm [shape: bf16[16,128], index: 0, kind: input, shape index: {}]   ;;  %s181_s1 = inlined_call_operand.vmem [shape: f32[1,128], index: 1, kind: input, shape index: {}]   ;;  %s182_s2 = inlined_call_operand.hbm [shape: bf16[16,128], index: 2, kind: output, shape index: {}]  }
   0x1   :  { %8 = vsyncpa [#allocation4], 0  ;;  %s146_s9 = smov [#allocation2]  }
   0x2   :  { %s14_s10 = sshll.u32 %s146_s9, 4  ;;  %s15_s10 = int_to_ptr.vmem [resolvable:$true] %s14_s10 }
   0x3   :  { %s110_s11 = scalar_lea.vmem %s15_s10, 128  ;;  %p115_p1 = scmp.lt.s32.totalorder %s15_s10, %s15_s10 }
   0x4   :  { %p111_p0 = scmp.ne.s32.totalorder %s15_s10, %s110_s11  ;;  %p116_p2 = scmp.lt.s32.totalorder %s110_s11, %s110_s11 }
   0x6   :  { %p117_p3 = por %p116_p2, %p115_p1 }
   0x8   :  { %p118_p4 = pnand %p117_p3, %p111_p0 }
   0xa   :  { %121 = shalt.err (!%p118_p4)
}
   0xb   :  { %s147_s12 = smov 64   ;;  %s148_s13 = smov 4  }
   0xc   :  { %20 = dma.hbm_to_vmem [thread:$0]  %s180_s0, 128, %s15_s10, [#allocation3], %s147_s12, %s147_s12, %s148_s13  }
   0xd   :  { %142 = dma.done.wait [#allocation3], 128  }
   0xe   :  { %143 = vsyncadd [#allocation3], 4294967168  ;;  %v86_v0 = vld [vmem:[#allocation2] sm:$0xff]   ;;  %s149_s17 = smov [#allocation5]  }
   0xf   :  { %v87_v1 = vunpack.c.l.bf16 %v86_v0  ;;  %v88_v2 = vunpack.c.h.bf16 %v86_v0  ;;  %v80_v12 = vld [vmem:[%s181_s1] ss:$0 sm:$0xff]  ;;  %s68_s18 = sshll.u32 %s149_s17, 4  ;;  %s69_s18 = int_to_ptr.vmem [resolvable:$true] %s68_s18 }
  0x10   :  { %s122_s19 = scalar_lea.vmem %s69_s18, 128  ;;  %p127_p6 = scmp.lt.s32.totalorder %s69_s18, %s69_s18 }
  0x11   :  { %v30_v3 = vmul.f32 %v87_v1, %v87_v1  ;;  %v31_v4 = vmul.f32 %v88_v2, %v88_v2  ;;  %p123_p5 = scmp.ne.s32.totalorder %s69_s18, %s122_s19  ;;  %p128_p7 = scmp.lt.s32.totalorder %s122_s19, %s122_s19 }
  0x13   :  { %32 = vadd.xlane.f32.xlu0 %v30_v3  ;;  %p129_p8 = por %p128_p7, %p127_p6 }
  0x15   :  { %p130_p9 = pnand %p129_p8, %p123_p5 }
  0x17   :  { %34 = vadd.xlane.f32.xlu0 %v31_v4 }
  0x9c   :  { %v33_v5 = vpop.xlane.xlu0 %32 }
  0x9d   :  { %v36_v6 = vmul.f32 0.03125, %v33_v5 }
  0x9f   :  { %v38_v7 = vadd.f32 1e-05, %v36_v6 }
  0xa0   :  { %v35_v8 = vpop.xlane.xlu0 %34 }
  0xa1   :  { %98 = vrsqrt.f32 %v38_v7  ;;  %v37_v9 = vmul.f32 0.03125, %v35_v8 }
  0xa3   :  { %v39_v10 = vadd.f32 1e-05, %v37_v9 }
  0xa5   :  { %100 = vrsqrt.f32 %v39_v10 }
  0xae   :  { %v99_v11 = vpop.eup %98 }
  0xaf   :  { %v49_v13 = vmul.f32 %v99_v11, %v80_v12 }
  0xb1   :  { %v51_v16 = vmul.f32 %v87_v1, %v49_v13 }
  0xb2   :  { %v101_v14 = vpop.eup %100 }
  0xb3   :  { %v50_v15 = vmul.f32 %v101_v14, %v80_v12 }
  0xb5   :  { %v52_v17 = vmul.f32 %v88_v2, %v50_v15 }
  0xb7   :  { %v92_v18 = vpack.c.bf16 %v52_v17, %v51_v16 }
  0xb9   :  { %93 = vst [vmem:[#allocation5] sm:$0xff] %v92_v18  }
  0xba   :  { %133 = shalt.err (!%p130_p9)
}
  0xbb   :  { %74 = dma.vmem_to_hbm [thread:$0]  %s69_s18, 128, %s182_s2, [#allocation4], %s147_s12, %s147_s12, %s148_s13  }
  0xbc   :  { %144 = dma.done.wait [#allocation4], 128  }
  0xbd   :  { %145 = vsyncadd [#allocation4], 4294967168 }
  0xbe   :  { %78 = vsyncpa [#allocation3], 1 }
  0xbf   :  { %79 = vsyncpa [#allocation4], 1 }

</bundles_post_ra>
